<compile_context>
chip_gen: v7x
topology: tpu7x:2x2x1
jax: 0.10.0
libtpu: 0.0.40
codegen_flags: <defaults>
</compile_context>

<pallas_src>
import jax
import jax.numpy as jnp
from jax.experimental import pallas as pl
from jax.experimental.pallas import tpu as pltpu


# ----------------------------------------------------------------------------- kernel
def se_kernel(x_ref, w1_ref, w2_ref, o_ref):
    # x_ref: (TM, L)   packed input rows (L = P*C lanes, lane-dense)
    # w1_ref: (L, P*H) block-diagonal W1^T      (resident across the grid)
    # w2_ref: (P*H, L) block-diagonal W2^T      (resident across the grid)
    # o_ref: (TM, L)
    x = x_ref[...]
    h = jnp.dot(x, w1_ref[...], preferred_element_type=jnp.float32)
    h = jnp.maximum(h, 0.0)                                     # ReLU
    s = jnp.dot(h, w2_ref[...], preferred_element_type=jnp.float32)
    s = pl.reciprocal(1.0 + jnp.exp(-s), approx=True)           # sigmoid on the EUP
    o_ref[...] = (x * s).astype(o_ref.dtype)                    # gate the input


# ----------------------------------------------------------------------------- helpers
def _round_up(a, b):
    return ((a + b - 1) // b) * b


def prepare_se_weights(w1, w2):
    """One-time weight prep (do this at model init, not per forward call).

    w1: (H, C), w2: (C, H)  -- PyTorch nn.Linear layout (out_features, in_features).
    Returns block-diagonal, pre-transposed weights and the lane pack factor P.
    """
    H, C = w1.shape
    if C < 128 and 128 % C == 0:
        pack = 128 // C          # fold `pack` rows into the 128-lane dim
    else:
        pack = 1                 # C already lane-friendly (or irregular): no packing
    w1_t = jnp.transpose(w1)     # (C, H)
    w2_t = jnp.transpose(w2)     # (H, C)
    if pack > 1:
        w1_bd = jax.scipy.linalg.block_diag(*([w1_t] * pack))   # (P*C, P*H)
        w2_bd = jax.scipy.linalg.block_diag(*([w2_t] * pack))   # (P*H, P*C)
    else:
        w1_bd, w2_bd = w1_t, w2_t
    return w1_bd, w2_bd, pack


# ----------------------------------------------------------------------------- wrapper
def se_forward(x, w1_bd, w2_bd, channel, pack, *, tm=1024):
    """x: (..., C).  w1_bd/w2_bd/pack come from prepare_se_weights."""
    orig_shape = x.shape
    C = channel
    assert orig_shape[-1] == C
    P = pack
    L = P * C                                   # lane width of a packed row

    x2d = x.reshape(-1, C)
    M = x2d.shape[0]

    Mp = -(-M // P)                             # packed rows needed
    tm_p = min(tm, _round_up(max(Mp, 1), 8))    # row tile (multiple of 8 sublanes)
    Mp_pad = _round_up(Mp, tm_p)
    total_rows = Mp_pad * P
    if total_rows > M:                          # zero-pad tail (sliced off below)
        x2d = jnp.pad(x2d, ((0, total_rows - M), (0, 0)))
    x_packed = x2d.reshape(Mp_pad, L)

    out_packed = pl.pallas_call(
        se_kernel,
        out_shape=jax.ShapeDtypeStruct((Mp_pad, L), x.dtype),
        grid_spec=pltpu.PrefetchScalarGridSpec(
            num_scalar_prefetch=0,
            grid=(Mp_pad // tm_p,),
            in_specs=[
                pl.BlockSpec((tm_p, L), lambda i: (i, 0)),          # packed x tile
                pl.BlockSpec(tuple(w1_bd.shape), lambda i: (0, 0)),  # W1 (resident)
                pl.BlockSpec(tuple(w2_bd.shape), lambda i: (0, 0)),  # W2 (resident)
            ],
            out_specs=pl.BlockSpec((tm_p, L), lambda i: (i, 0)),
        ),
        compiler_params=pltpu.CompilerParams(
            dimension_semantics=("parallel",)),
    )(x_packed, w1_bd, w2_bd)

    out2d = out_packed.reshape(total_rows, C)[:M]
    return out2d.reshape(orig_shape)


# ----------------------------------------------------------------------------- reference
def se_reference(x, w1, w2):
    h = jnp.maximum(jnp.einsum("...c,hc->...h", x, w1), 0.0)
    s = jax.nn.sigmoid(jnp.einsum("...h,ch->...c", h, w2))
    return x * s


if __name__ == "__main__":
    # Small shapes consistent with the module: channel=32, reduction=4
    B, N, C, R = 2, 8, 32, 4
    H = C // R

    key = jax.random.PRNGKey(0)
    kx, k1, k2 = jax.random.split(key, 3)
    x = jax.random.normal(kx, (B, N, C), dtype=jnp.float32)
    # PyTorch Linear layout: (out_features, in_features)
    w1 = jax.random.normal(k1, (H, C), dtype=jnp.float32) * (1.0 / jnp.sqrt(C))
    w2 = jax.random.normal(k2, (C, H), dtype=jnp.float32) * (1.0 / jnp.sqrt(H))

    # One-time weight prep (transpose + block-diagonal lane packing).
    w1_bd, w2_bd, P = prepare_se_weights(w1, w2)

    # Main check (even row count -> packing, no padding needed).
    out = se_forward(x, w1_bd, w2_bd, C, P)
    jax.block_until_ready(out)
    ref = se_reference(x, w1, w2)
    assert out.shape == x.shape
    # tolerance covers the EUP approximate-reciprocal sigmoid
    assert jnp.allclose(out, ref, atol=2e-3, rtol=2e-3), "mismatch vs reference"

    # Ragged check: M=21 not divisible by the pack factor or tile -> pad path.
    x_odd = jax.random.normal(jax.random.PRNGKey(1), (3, 7, C), dtype=jnp.float32)
    out_odd = se_forward(x_odd, w1_bd, w2_bd, C, P)
    jax.block_until_ready(out_odd)
    ref_odd = se_reference(x_odd, w1, w2)
    assert out_odd.shape == x_odd.shape
    assert jnp.allclose(out_odd, ref_odd, atol=2e-3, rtol=2e-3), "mismatch (ragged)"

    print("KERNEL_OK")
</pallas_src>

<mosaic_0001>
module attributes {stable_mosaic.version = 11 : i64} {
  func.func @se_kernel(%arg0: i32, %arg1: memref<8x128xf32, #tpu.memory_space<vmem>>, %arg2: memref<128x32xf32, #tpu.memory_space<vmem>>, %arg3: memref<32x128xf32, #tpu.memory_space<vmem>>, %arg4: memref<8x128xf32, #tpu.memory_space<vmem>>) attributes {dimension_semantics = [#tpu.dimension_semantics<parallel>], iteration_bounds = array<i64: 1>, scalar_prefetch = 0 : i64, scratch_operands = 0 : i64, tpu.core_type = #tpu.core_type<tc>, window_params = [{transform_indices = @transform_0, window_bounds = array<i64: 8, 128>}, {pipeline_mode = #tpu.pipeline_mode<synchronous>, transform_indices = @transform_1, window_bounds = array<i64: 128, 32>}, {pipeline_mode = #tpu.pipeline_mode<synchronous>, transform_indices = @transform_2, window_bounds = array<i64: 32, 128>}, {transform_indices = @transform_3, window_bounds = array<i64: 8, 128>}]} {
    %c0 = arith.constant 0 : index
    %c0_0 = arith.constant 0 : index
    %0 = vector.load %arg1[%c0, %c0_0] : memref<8x128xf32, #tpu.memory_space<vmem>>, vector<8x128xf32>
    %c0_1 = arith.constant 0 : index
    %c0_2 = arith.constant 0 : index
    %1 = vector.load %arg2[%c0_1, %c0_2] : memref<128x32xf32, #tpu.memory_space<vmem>>, vector<128x32xf32>
    %cst = arith.constant dense<0.000000e+00> : vector<8x32xf32>
    %2 = tpu.matmul %0, %1, %cst {dimension_numbers = #tpu.dot_dimension_numbers<[1], [0], [0], [1], [0, 0, 1, 1], [], []>} : vector<8x128xf32>, vector<128x32xf32>, vector<8x32xf32> -> vector<8x32xf32>
    %cst_3 = arith.constant 0.000000e+00 : f32
    %3 = vector.broadcast %cst_3 : f32 to vector<8x32xf32>
    %4 = arith.maximumf %2, %3 : vector<8x32xf32>
    %c0_4 = arith.constant 0 : index
    %c0_5 = arith.constant 0 : index
    %5 = vector.load %arg3[%c0_4, %c0_5] : memref<32x128xf32, #tpu.memory_space<vmem>>, vector<32x128xf32>
    %cst_6 = arith.constant dense<0.000000e+00> : vector<8x128xf32>
    %6 = tpu.matmul %4, %5, %cst_6 {dimension_numbers = #tpu.dot_dimension_numbers<[1], [0], [0], [1], [0, 0, 1, 1], [], []>} : vector<8x32xf32>, vector<32x128xf32>, vector<8x128xf32> -> vector<8x128xf32>
    %cst_7 = arith.constant 0.000000e+00 : f32
    %7 = vector.broadcast %cst_7 : f32 to vector<8x128xf32>
    %8 = arith.subf %7, %6 : vector<8x128xf32>
    %9 = math.exp %8 : vector<8x128xf32>
    %cst_8 = arith.constant 1.000000e+00 : f32
    %10 = vector.broadcast %cst_8 : f32 to vector<8x128xf32>
    %11 = arith.addf %10, %9 : vector<8x128xf32>
    %12 = tpu.reciprocal %11 {approx = true} : vector<8x128xf32> -> vector<8x128xf32>
    %13 = arith.mulf %0, %12 : vector<8x128xf32>
    %c0_9 = arith.constant 0 : index
    %c0_10 = arith.constant 0 : index
    %14 = vector.load %arg4[%c0_9, %c0_10] : memref<8x128xf32, #tpu.memory_space<vmem>>, vector<8x128xf32>
    tpu.vector_store %arg4[%c0_9, %c0_10], %13 {strides = array<i32>} : memref<8x128xf32, #tpu.memory_space<vmem>>, vector<8x128xf32>,
    return
  }
  func.func @transform_0(%arg0: i32) -> (i32, i32) {
    %c0_i32 = arith.constant 0 : i32
    %c0_i32_0 = arith.constant 0 : i32
    return %arg0, %c0_i32 : i32, i32
  }
  func.func @transform_1(%arg0: i32) -> (i32, i32) {
    %c0_i32 = arith.constant 0 : i32
    %c0_i32_0 = arith.constant 0 : i32
    %c0_i32_1 = arith.constant 0 : i32
    return %c0_i32, %c0_i32_0 : i32, i32
  }
  func.func @transform_2(%arg0: i32) -> (i32, i32) {
    %c0_i32 = arith.constant 0 : i32
    %c0_i32_0 = arith.constant 0 : i32
    %c0_i32_1 = arith.constant 0 : i32
    return %c0_i32, %c0_i32_0 : i32, i32
  }
  func.func @transform_3(%arg0: i32) -> (i32, i32) {
    %c0_i32 = arith.constant 0 : i32
    %c0_i32_0 = arith.constant 0 : i32
    return %arg0, %c0_i32 : i32, i32
  }
}

</mosaic_0001>

<bundles_post_ra>
// kernel: tpu_custom_call.1
= control target key start
LH: loop header
LB: loop body
LE: loop exit
PB: predicated region body
PF: predicated region fallthrough
CT: control target
= control target key end

     0   :  { %v333_v3 = vmov 0.0|0.0   ;;  %vm334_vm0 = vmmov 0   ;;  %v335_v6 = vmov 0.0   ;;  %s432_s0 = inlined_call_operand.vmem [shape: f32[8,128], index: 0, kind: input, shape index: {}]   ;;  %s433_s1 = inlined_call_operand.vmem [shape: f32[128,32], index: 1, kind: input, shape index: {}]   ;;  %s434_s2 = inlined_call_operand.vmem [shape: f32[32,128], index: 2, kind: input, shape index: {}]   ;;  %s435_s3 = inlined_call_operand.hbm [shape: f32[8,128], index: 3, kind: output, shape index: {}]  }
   0x1   :  { %v16_v0 = vld [vmem:[%s433_s1] sm:$0xff]  ;;  %v17_v1 = vld [vmem:[%s433_s1 + $0x8] sm:$0xff]  ;;  %v18_v2 = vld [vmem:[%s433_s1 + $0x10] sm:$0xff]  ;;  %271 = vmatprep.subr.bf16.mxu0 %v333_v3  ;;  %257 = vmatprep.mubr.msk.f32.mxu0 %vm334_vm0, %v335_v6 }
   0x2   :  { %v272_v4 = vpack.c.bf16 %v17_v1, %v16_v0  ;;  %v19_v5 = vld [vmem:[%s433_s1 + $0x18] sm:$0xff]  ;;  %295 = vmatprep.subr.bf16.mxu1 %v333_v3  ;;  %268 = vmatprep.mubr.msk.f32.mxu1 %vm334_vm0, %v335_v6  ;;  %v20_v8 = vld [vmem:[%s433_s1 + $0x20] sm:$0xff]  ;;  %v21_v9 = vld [vmem:[%s433_s1 + $0x28] sm:$0xff] }
   0x3   :  { %v275_v7 = vpack.c.bf16 %v19_v5, %v18_v2  ;;  %v103_v10 = vld [vmem:[%s434_s2] sm:$0xff]  ;;  %v104_v11 = vld [vmem:[%s434_s2 + $0x8] sm:$0xff] }
   0x4   :  { %273 = vmatpush3.bf16.msra.mxu0 %v272_v4 }
   0x5   :  { %274 = vmatprep.subr.bf16.mxu0 %v333_v3 }
   0x6   :  { %8 = vsyncpa [#allocation3], 0  ;;  %v278_v12 = vpack.c.bf16 %v21_v9, %v20_v8  ;;  %v296_v13 = vpack.c.bf16 %v104_v11, %v103_v10  ;;  %v22_v14 = vld [vmem:[%s433_s1 + $0x30] sm:$0xff]  ;;  %v23_v15 = vld [vmem:[%s433_s1 + $0x38] sm:$0xff]  ;;  %vm107_vm1 = vcmask 261120  }
   0x7   :  { %v281_v16 = vpack.c.bf16 %v23_v15, %v22_v14  ;;  %v24_v17 = vld [vmem:[%s433_s1 + $0x40] sm:$0xff]  ;;  %v25_v18 = vld [vmem:[%s433_s1 + $0x48] sm:$0xff]  ;;  %v26_v20 = vld [vmem:[%s433_s1 + $0x50] sm:$0xff] }
   0x8   :  { %276 = vmatpush3.bf16.msra.mxu0 %v275_v7  ;;  %297 = vmatpush3.bf16.msra.mxu1 %v296_v13  ;;  %v284_v19 = vpack.c.bf16 %v25_v18, %v24_v17  ;;  %v27_v21 = vld [vmem:[%s433_s1 + $0x58] sm:$0xff]  ;;  %v28_v23 = vld [vmem:[%s433_s1 + $0x60] sm:$0xff]  ;;  %v29_v24 = vld [vmem:[%s433_s1 + $0x68] sm:$0xff] }
   0x9   :  { %277 = vmatprep.subr.bf16.mxu0 %v333_v3  ;;  %298 = vmatprep.subr.bf16.mxu1 %v333_v3  ;;  %v287_v22 = vpack.c.bf16 %v27_v21, %v26_v20  ;;  %v290_v25 = vpack.c.bf16 %v29_v24, %v28_v23  ;;  %v30_v26 = vld [vmem:[%s433_s1 + $0x70] sm:$0xff]  ;;  %v31_v27 = vld [vmem:[%s433_s1 + $0x78] sm:$0xff]  ;;  %v15_v29 = vld [vmem:[%s432_s0] sm:$0xff]  ;;  %s336_s0 = smov [#allocation2]  }
   0xa   :  { %v293_v28 = vpack.c.bf16 %v31_v27, %v30_v26  ;;  %v105_v30 = vld [vmem:[%s434_s2 + $0x10] sm:$0xff]  ;;  %v106_v31 = vld [vmem:[%s434_s2 + $0x18] sm:$0xff]  ;;  %s194_s1 = sshll.u32 %s336_s0, 4  ;;  %s195_s1 = int_to_ptr.vmem [resolvable:$true] %s194_s1 }
   0xb   :  { %v299_v32 = vpack.c.bf16 %v106_v31, %v105_v30  ;;  %s309_s2 = scalar_lea.vmem %s195_s1, 128  ;;  %p314_p1 = scmp.lt.s32.totalorder %s195_s1, %s195_s1 }
   0xc   :  { %279 = vmatpush3.bf16.msra.mxu0 %v278_v12  ;;  %p310_p0 = scmp.ne.s32.totalorder %s195_s1, %s309_s2  ;;  %p315_p2 = scmp.lt.s32.totalorder %s309_s2, %s309_s2 }
   0xd   :  { %280 = vmatprep.subr.bf16.mxu0 %v333_v3  ;;  %300 = vmatpush3.bf16.msra.mxu1 %v299_v32 }
   0xe   :  { %p316_p3 = por %p315_p2, %p314_p1 }
  0x10   :  { %282 = vmatpush3.bf16.msra.mxu0 %v281_v16  ;;  %p317_p4 = pnand %p316_p3, %p310_p0 }
  0x11   :  { %283 = vmatprep.subr.bf16.mxu0 %v333_v3 }
  0x14   :  { %285 = vmatpush3.bf16.msra.mxu0 %v284_v19 }
  0x15   :  { %286 = vmatprep.subr.bf16.mxu0 %v333_v3 }
  0x18   :  { %288 = vmatpush3.bf16.msra.mxu0 %v287_v22 }
  0x19   :  { %289 = vmatprep.subr.bf16.mxu0 %v333_v3 }
  0x1c   :  { %291 = vmatpush3.bf16.msra.mxu0 %v290_v25 }
  0x1d   :  { %292 = vmatprep.subr.bf16.mxu0 %v333_v3 }
  0x20   :  { %294 = vmatpush3.bf16.msra.mxu0 %v293_v28 }
  0x23   :  { %258 = vmatmul.mubr.f32.vlgmr.msra.gmra.mrb[0].mxu0 %v15_v29 }
  0xf6   :  { %v98_v33 = vpop.f32.mrb[0].mxu0 }
  0xf7   :  { %v102_v34 = vmax.f32 %v98_v33, 0.0  ;;  %v259_v35 = vpop.f32.mrb[1].mxu0 }
  0xf9   :  { %269 = vmatmul.mubr.msk.f32.vlgmr.msra.gmra.mrb[0].mxu1 %vm107_vm1, %v102_v34 }
 0x1cc   :  { %v177_v36 = vpop.f32.mrb[0].mxu1 }
 0x1cd   :  { %v181_v37 = vsub.f32 0.0, %v177_v36  ;;  %v270_v38 = vpop.f32.mrb[1].mxu1 }
 0x1cf   :  { %v182_v39 = vmul.f32 1.442695, %v181_v37 }
 0x1d1   :  { %305 = vpow2.f32 %v182_v39 }
 0x1db   :  { %v306_v40 = vpop.eup %305 }
 0x1dc   :  { %v184_v41 = vadd.f32 1.0, %v306_v40 }
 0x1de   :  { %307 = vrcp.f32 %v184_v41 }
 0x1e8   :  { %v308_v42 = vpop.eup %307 }
 0x1e9   :  { %v186_v43 = vmul.f32 %v308_v42, %v15_v29 }
 0x1eb   :  { %187 = vst [vmem:[#allocation2] sm:$0xff] %v186_v43 }
 0x1ec   :  { %320 = shalt.err (!%p317_p4)
}
 0x1ed   :  { %s321_s29 = scalar_lea.hbm %s435_s3, 128 }
 0x1ee   :  { %p322_p5 = scmp.ne.s32.totalorder %s435_s3, %s321_s29  ;;  %p325_p6 = scmp.lt.u32.totalorder %s321_s29, %s435_s3 }
 0x1f0   :  { %p327_p7 = pnand %p325_p6, %p322_p5 }
 0x1f2   :  { %330 = shalt.err (!%p327_p7)
}
 0x1f3   :  { %197 = dma.vmem_to_hbm [thread:$0]  %s195_s1, 128, %s435_s3, [#allocation3]  }
 0x1f4   :  { %331 = dma.done.wait [#allocation3], 128  }
 0x1f5   :  { %332 = vsyncadd [#allocation3], 4294967168 }
 0x1f6   :  { %201 = vsyncpa [#allocation3], 1 }

</bundles_post_ra>
